<compile_context>
chip_gen: v6e
topology: v6e:2x2x1
jax: 0.10.0
libtpu: 0.0.40
codegen_flags: <defaults>
</compile_context>

<pallas_src>
from functools import partial

import jax
import jax.numpy as jnp
from jax.experimental import pallas as pl
from jax.experimental.pallas import tpu as pltpu


# ----------------------------------------------------------------------------
# Kernel
# ----------------------------------------------------------------------------
def node_block_kernel(x_ref, wt_ref, b_ref, th_ref, ls_ref, out_ref, *, depth):
    """One (batch-tile, tree-tile) of the NODE block.

    x_ref  : (TB, D_in)        wt_ref : (D_in, TT)      b_ref  : (1, TT)
    th_ref : (depth, TT)       ls_ref : (L, TT)         out_ref: (TB, TT)
    """
    # Feature selector for every tree in the tile at once (MXU, f32 accumulate).
    feat = jnp.dot(x_ref[...], wt_ref[...],
                   preferred_element_type=jnp.float32) + b_ref[...]      # (TB, TT)

    # All decision planes in one shot; EUP work is hidden under the VALU-bound
    # contraction below.  dec_all[d] == sigmoid(feat - thresholds[:, d]).
    th = th_ref[...]                                                     # (depth, TT)
    dec_all = jax.nn.sigmoid(feat[None, :, :] - th[:, None, :])          # (depth, TB, TT)

    num_leaf = 2 ** depth
    ls = ls_ref[...]                                                     # (L, TT)

    # Contract the leaf sum level by level on 2-D (TB, TT) planes:
    #   u_{D-1}[p] = (1-dec_{D-1})*ls[2p] + dec_{D-1}*ls[2p+1]
    #   u_d[p]     = (1-dec_d)*u_{d+1}[2p] + dec_d*u_{d+1}[2p+1]
    #   out        = u_0[0]
    # (a + dec*(b-a) == (1-dec)*a + dec*b; exact same math as the reference.)
    dec = dec_all[depth - 1]                                             # (TB, TT)
    planes = []
    for j in range(num_leaf // 2):
        lo = ls[2 * j, :][None, :]           # leaf with last bit 0, (1, TT)
        hi = ls[2 * j + 1, :][None, :]       # leaf with last bit 1, (1, TT)
        planes.append(lo + dec * (hi - lo))                              # (TB, TT)

    for d in range(depth - 2, -1, -1):       # static unroll; depth is tiny
        dec = dec_all[d]
        planes = [planes[2 * j] + dec * (planes[2 * j + 1] - planes[2 * j])
                  for j in range(len(planes) // 2)]

    out_ref[...] = planes[0].astype(out_ref.dtype)


# ----------------------------------------------------------------------------
# Tiling helpers
# ----------------------------------------------------------------------------
def _legal_tiles(total, align):
    """Divisors of `total` that are multiples of `align` (plus the full
    extent, which is always a legal block dim), sorted descending."""
    tiles = {total}
    c = align
    while c <= total:
        if total % c == 0:
            tiles.add(c)
        c += align
    return sorted(tiles, reverse=True)


def _shrink(v, opts):
    """Next smaller legal tile from the descending list `opts` (or `v`)."""
    for t in opts:
        if t < v:
            return t
    return v


# ----------------------------------------------------------------------------
# Wrapper
# ----------------------------------------------------------------------------
def node_block_forward(x, w_t, bias, thresholds, leaf_scores, binary_matrix=None,
                       *, depth, block_b=256, block_t=256,
                       matmul_dtype=jnp.bfloat16):
    """NODEBlock forward: (B, D_in) -> (B, num_trees) float32.

    `binary_matrix` is accepted for API parity with the PyTorch module but is
    not needed by the kernel: the module always uses the canonical binary code
    ordering, which the level contraction encodes implicitly.
    """
    B, D_in = x.shape
    T = w_t.shape[1]
    L = leaf_scores.shape[1]
    assert depth >= 1
    assert thresholds.shape == (T, depth)
    assert L == 2 ** depth

    # ---- host-side layout plumbing (one-time, outside the kernel) ----------
    th_dT = jnp.asarray(thresholds, jnp.float32).T        # (depth, T)
    ls_LT = jnp.asarray(leaf_scores, jnp.float32).T       # (L, T)
    bias2 = jnp.asarray(bias, jnp.float32).reshape(1, T)  # (1, T)

    if matmul_dtype is None:
        x = jnp.asarray(x, jnp.float32)
        w_t = jnp.asarray(w_t, jnp.float32)
    else:
        # bf16 matmul inputs: full-rate MXU on v5e/v6e/v7x, half the x / w_t
        # HBM traffic + double-buffer VMEM.  Sigmoid / contraction stay f32.
        x = jnp.asarray(x, matmul_dtype)
        w_t = jnp.asarray(w_t, matmul_dtype)
    in_itemsize = x.dtype.itemsize

    # ---- VMEM budget (depth/L aware) ----------------------------------------
    try:
        vmem_cap = int(getattr(pltpu.get_tpu_info(), "vmem_capacity_bytes", 0))
    except Exception:
        vmem_cap = 0
    if vmem_cap <= 0:
        vmem_cap = 64 * 2 ** 20            # v7x lower bound; safe everywhere
    vmem_limit = (vmem_cap * 3) // 4       # explicit scoped limit, with headroom
    tile_budget = int(vmem_limit * 0.8)

    def footprint(tb, tt):
        live_planes = L // 2 + depth + 6                  # contraction peak + dec + feat + slack
        temps = live_planes * tb * tt * 4
        io = 2 * (tb * D_in + D_in * tt) * in_itemsize    # x, w_t (double-buffered)
        io += 2 * tb * tt * 4                             # output (double-buffered)
        io += 2 * (L + depth + 1) * tt * 4                # leaf scores, thresholds, bias
        return temps + io

    # ---- tiling --------------------------------------------------------------
    b_align = 16 if in_itemsize == 2 else 8   # bf16 sublane tiling is (16, 128)
    tb_opts = _legal_tiles(B, b_align)
    tt_opts = _legal_tiles(T, 128)            # lane-dense (unmasked) output stores
    tb = next((t for t in tb_opts if t <= block_b), tb_opts[-1])
    tt = next((t for t in tt_opts if t <= block_t), tt_opts[-1])

    # Shrink until the live working set fits; prefer shrinking the batch tile
    # so the tree tile stays a multiple of 128 (lane-dense output stores).
    while footprint(tb, tt) > tile_budget:
        if tb > tb_opts[-1]:
            tb = _shrink(tb, tb_opts)
        elif tt > tt_opts[-1]:
            tt = _shrink(tt, tt_opts)
        else:
            break

    # v7x has two TensorCores: make sure the grid has >= 2 programs when the
    # problem allows it, so dimension_semantics=("parallel", ...) can shard.
    if (B // tb) * (T // tt) < 2:
        if tb > tb_opts[-1]:
            tb = _shrink(tb, tb_opts)
        elif tt > tt_opts[-1]:
            tt = _shrink(tt, tt_opts)

    nb, nt = B // tb, T // tt

    # ---- grid order: do not redundantly refetch the bigger operand ----------
    # batch-outer refetches the tree parameters (nb-1) extra times; tree-outer
    # refetches x (nt-1) extra times.  Pick the cheaper order.
    tree_param_bytes = D_in * T * in_itemsize + (L + depth + 1) * T * 4
    x_bytes = B * D_in * in_itemsize
    tree_major = (nb - 1) * tree_param_bytes > (nt - 1) * x_bytes

    if tree_major:
        grid = (nt, nb)
        x_map = lambda j, i: (i, 0)
        w_map = lambda j, i: (0, j)
        row_map = lambda j, i: (0, j)
        out_map = lambda j, i: (i, j)
    else:
        grid = (nb, nt)
        x_map = lambda i, j: (i, 0)
        w_map = lambda i, j: (0, j)
        row_map = lambda i, j: (0, j)
        out_map = lambda i, j: (i, j)

    # TODO(synk): pipeline_mode=pl.Buffered(1) on the tiny grid-invariant
    # parameter specs would shave a few KiB of double-buffer VMEM; omitted for
    # portability since the tables are negligible next to the tile budget.
    return pl.pallas_call(
        partial(node_block_kernel, depth=depth),
        out_shape=jax.ShapeDtypeStruct((B, T), jnp.float32),
        grid=grid,
        in_specs=[
            pl.BlockSpec((tb, D_in), x_map),     # x          : batch-tiled
            pl.BlockSpec((D_in, tt), w_map),     # w_t        : tree-tiled
            pl.BlockSpec((1, tt), row_map),      # bias
            pl.BlockSpec((depth, tt), row_map),  # thresholds^T
            pl.BlockSpec((L, tt), row_map),      # leaf_scores^T
        ],
        out_specs=pl.BlockSpec((tb, tt), out_map),
        compiler_params=pltpu.CompilerParams(
            dimension_semantics=("parallel", "parallel"),
            vmem_limit_bytes=vmem_limit),
    )(x, w_t, bias2, th_dT, ls_LT)


# ----------------------------------------------------------------------------
# Pure-JAX reference (mirrors the PyTorch NODEBlock forward)
# ----------------------------------------------------------------------------
def node_block_reference(x, w_t, bias, thresholds, leaf_scores, binary_matrix):
    feat = x @ w_t + bias                                                  # (B, T)
    dec = jax.nn.sigmoid(feat[:, :, None] - thresholds[None, :, :])        # (B, T, depth)
    bm = binary_matrix[None, None, :, :]                                   # (1, 1, L, depth)
    d = dec[:, :, None, :]                                                 # (B, T, 1, depth)
    path = jnp.prod(d * bm + (1.0 - d) * (1.0 - bm), axis=-1)              # (B, T, L)
    return jnp.sum(path * leaf_scores[None, :, :], axis=-1)                # (B, T)


# ----------------------------------------------------------------------------
# Self-test
# ----------------------------------------------------------------------------
if __name__ == "__main__":
    def make_params(key, input_dim, num_trees, depth):
        k_w, k_b, k_th, k_ls = jax.random.split(key, 4)
        bound = 1.0 / float(input_dim) ** 0.5
        w_t = jax.random.uniform(k_w, (input_dim, num_trees), jnp.float32, -bound, bound)
        bias = jax.random.uniform(k_b, (1, num_trees), jnp.float32, -bound, bound)
        thresholds = jax.random.normal(k_th, (num_trees, depth), dtype=jnp.float32)
        leaf_scores = jax.random.normal(k_ls, (num_trees, 2 ** depth), dtype=jnp.float32)
        codes = jnp.arange(2 ** depth)
        shifts = jnp.arange(depth - 1, -1, -1)
        binary_matrix = ((codes[:, None] >> shifts[None, :]) & 1).astype(jnp.float32)
        return w_t, bias, thresholds, leaf_scores, binary_matrix

    key = jax.random.PRNGKey(0)
    k1, k2, kx1, kx2 = jax.random.split(key, 4)

    # --- test 1: tiny shapes matching the module defaults --------------------
    input_dim, num_trees, depth = 32, 4, 3
    w_t, bias, th, ls, bm = make_params(k1, input_dim, num_trees, depth)
    x = jax.random.normal(kx1, (8, input_dim), dtype=jnp.float32)
    ref = node_block_reference(x, w_t, bias, th, ls, bm)

    out_f32 = jax.block_until_ready(node_block_forward(
        x, w_t, bias, th, ls, bm, depth=depth, matmul_dtype=None))
    assert out_f32.shape == (8, num_trees), out_f32.shape
    assert jnp.allclose(out_f32, ref, atol=1e-5, rtol=1e-5), "f32 mismatch vs reference"

    out_bf16 = jax.block_until_ready(node_block_forward(
        x, w_t, bias, th, ls, bm, depth=depth))        # default bf16 matmul inputs
    assert jnp.allclose(out_bf16, ref, atol=5e-2, rtol=5e-2), "bf16 mismatch vs reference"

    # --- test 2: exercises lane tiling, grid order and the megacore split ----
    input_dim, num_trees, depth = 32, 256, 4
    w_t, bias, th, ls, bm = make_params(k2, input_dim, num_trees, depth)
    x = jax.random.normal(kx2, (64, input_dim), dtype=jnp.float32)
    ref = node_block_reference(x, w_t, bias, th, ls, bm)

    out = jax.block_until_ready(node_block_forward(
        x, w_t, bias, th, ls, bm, depth=depth, matmul_dtype=None))
    assert out.shape == (64, num_trees), out.shape
    assert jnp.allclose(out, ref, atol=1e-4, rtol=1e-4), "tiled mismatch vs reference"

    print("KERNEL_OK")
</pallas_src>

<mosaic_0001>
module attributes {stable_mosaic.version = 11 : i64} {
  func.func @node_block_kernel(%arg0: i32, %arg1: i32, %arg2: memref<8x32xf32, #tpu.memory_space<vmem>>, %arg3: memref<32x4xf32, #tpu.memory_space<vmem>>, %arg4: memref<1x4xf32, #tpu.memory_space<vmem>>, %arg5: memref<3x4xf32, #tpu.memory_space<vmem>>, %arg6: memref<8x4xf32, #tpu.memory_space<vmem>>, %arg7: memref<8x4xf32, #tpu.memory_space<vmem>>) attributes {dimension_semantics = [#tpu.dimension_semantics<parallel>, #tpu.dimension_semantics<parallel>], iteration_bounds = array<i64: 1, 1>, scalar_prefetch = 0 : i64, scratch_operands = 0 : i64, tpu.core_type = #tpu.core_type<tc>, window_params = [{transform_indices = @transform_0, window_bounds = array<i64: 8, 32>}, {transform_indices = @transform_1, window_bounds = array<i64: 32, 4>}, {transform_indices = @transform_2, window_bounds = array<i64: 1, 4>}, {transform_indices = @transform_3, window_bounds = array<i64: 3, 4>}, {transform_indices = @transform_4, window_bounds = array<i64: 8, 4>}, {transform_indices = @transform_5, window_bounds = array<i64: 8, 4>}]} {
    %c0 = arith.constant 0 : index
    %c0_0 = arith.constant 0 : index
    %0 = vector.load %arg2[%c0, %c0_0] : memref<8x32xf32, #tpu.memory_space<vmem>>, vector<8x32xf32>
    %c0_1 = arith.constant 0 : index
    %c0_2 = arith.constant 0 : index
    %1 = vector.load %arg3[%c0_1, %c0_2] : memref<32x4xf32, #tpu.memory_space<vmem>>, vector<32x4xf32>
    %cst = arith.constant dense<0.000000e+00> : vector<8x4xf32>
    %2 = tpu.matmul %0, %1, %cst {dimension_numbers = #tpu.dot_dimension_numbers<[1], [0], [0], [1], [0, 0, 1, 1], [], []>} : vector<8x32xf32>, vector<32x4xf32>, vector<8x4xf32> -> vector<8x4xf32>
    %c0_3 = arith.constant 0 : index
    %c0_4 = arith.constant 0 : index
    %3 = vector.load %arg4[%c0_3, %c0_4] : memref<1x4xf32, #tpu.memory_space<vmem>>, vector<1x4xf32>
    %4 = vector.broadcast %3 : vector<1x4xf32> to vector<8x4xf32>
    %5 = arith.addf %2, %4 : vector<8x4xf32>
    %c0_5 = arith.constant 0 : index
    %c0_6 = arith.constant 0 : index
    %6 = vector.load %arg5[%c0_5, %c0_6] : memref<3x4xf32, #tpu.memory_space<vmem>>, vector<3x4xf32>
    %7 = vector.shape_cast %5 : vector<8x4xf32> to vector<1x8x4xf32>
    %8 = vector.shape_cast %6 : vector<3x4xf32> to vector<3x1x4xf32>
    %9 = vector.broadcast %7 : vector<1x8x4xf32> to vector<3x8x4xf32>
    %10 = vector.broadcast %8 : vector<3x1x4xf32> to vector<3x8x4xf32>
    %11 = arith.subf %9, %10 : vector<3x8x4xf32>
    %12 = arith.negf %11 : vector<3x8x4xf32>
    %13 = math.exp %12 : vector<3x8x4xf32>
    %cst_7 = arith.constant 1.000000e+00 : f32
    %14 = vector.broadcast %cst_7 : f32 to vector<3x8x4xf32>
    %15 = arith.addf %14, %13 : vector<3x8x4xf32>
    %16 = arith.divf %14, %15 : vector<3x8x4xf32>
    %c0_8 = arith.constant 0 : index
    %c0_9 = arith.constant 0 : index
    %17 = vector.load %arg6[%c0_8, %c0_9] : memref<8x4xf32, #tpu.memory_space<vmem>>, vector<8x4xf32>
    %18 = vector.extract_strided_slice %16 {offsets = [2, 0, 0], sizes = [1, 8, 4], strides = [1, 1, 1]} : vector<3x8x4xf32> to vector<1x8x4xf32>
    %19 = vector.shape_cast %18 : vector<1x8x4xf32> to vector<8x4xf32>
    %20 = vector.extract_strided_slice %17 {offsets = [0, 0], sizes = [1, 4], strides = [1, 1]} : vector<8x4xf32> to vector<1x4xf32>
    %21 = vector.shape_cast %20 : vector<1x4xf32> to vector<4xf32>
    %22 = vector.shape_cast %21 : vector<4xf32> to vector<1x4xf32>
    %23 = vector.extract_strided_slice %17 {offsets = [1, 0], sizes = [1, 4], strides = [1, 1]} : vector<8x4xf32> to vector<1x4xf32>
    %24 = vector.shape_cast %23 : vector<1x4xf32> to vector<4xf32>
    %25 = vector.shape_cast %24 : vector<4xf32> to vector<1x4xf32>
    %26 = arith.subf %25, %22 : vector<1x4xf32>
    %27 = vector.broadcast %26 : vector<1x4xf32> to vector<8x4xf32>
    %28 = arith.mulf %19, %27 : vector<8x4xf32>
    %29 = vector.broadcast %22 : vector<1x4xf32> to vector<8x4xf32>
    %30 = arith.addf %29, %28 : vector<8x4xf32>
    %31 = vector.extract_strided_slice %17 {offsets = [2, 0], sizes = [1, 4], strides = [1, 1]} : vector<8x4xf32> to vector<1x4xf32>
    %32 = vector.shape_cast %31 : vector<1x4xf32> to vector<4xf32>
    %33 = vector.shape_cast %32 : vector<4xf32> to vector<1x4xf32>
    %34 = vector.extract_strided_slice %17 {offsets = [3, 0], sizes = [1, 4], strides = [1, 1]} : vector<8x4xf32> to vector<1x4xf32>
    %35 = vector.shape_cast %34 : vector<1x4xf32> to vector<4xf32>
    %36 = vector.shape_cast %35 : vector<4xf32> to vector<1x4xf32>
    %37 = arith.subf %36, %33 : vector<1x4xf32>
    %38 = vector.broadcast %37 : vector<1x4xf32> to vector<8x4xf32>
    %39 = arith.mulf %19, %38 : vector<8x4xf32>
    %40 = vector.broadcast %33 : vector<1x4xf32> to vector<8x4xf32>
    %41 = arith.addf %40, %39 : vector<8x4xf32>
    %42 = vector.extract_strided_slice %17 {offsets = [4, 0], sizes = [1, 4], strides = [1, 1]} : vector<8x4xf32> to vector<1x4xf32>
    %43 = vector.shape_cast %42 : vector<1x4xf32> to vector<4xf32>
    %44 = vector.shape_cast %43 : vector<4xf32> to vector<1x4xf32>
    %45 = vector.extract_strided_slice %17 {offsets = [5, 0], sizes = [1, 4], strides = [1, 1]} : vector<8x4xf32> to vector<1x4xf32>
    %46 = vector.shape_cast %45 : vector<1x4xf32> to vector<4xf32>
    %47 = vector.shape_cast %46 : vector<4xf32> to vector<1x4xf32>
    %48 = arith.subf %47, %44 : vector<1x4xf32>
    %49 = vector.broadcast %48 : vector<1x4xf32> to vector<8x4xf32>
    %50 = arith.mulf %19, %49 : vector<8x4xf32>
    %51 = vector.broadcast %44 : vector<1x4xf32> to vector<8x4xf32>
    %52 = arith.addf %51, %50 : vector<8x4xf32>
    %53 = vector.extract_strided_slice %17 {offsets = [6, 0], sizes = [1, 4], strides = [1, 1]} : vector<8x4xf32> to vector<1x4xf32>
    %54 = vector.shape_cast %53 : vector<1x4xf32> to vector<4xf32>
    %55 = vector.shape_cast %54 : vector<4xf32> to vector<1x4xf32>
    %56 = vector.extract_strided_slice %17 {offsets = [7, 0], sizes = [1, 4], strides = [1, 1]} : vector<8x4xf32> to vector<1x4xf32>
    %57 = vector.shape_cast %56 : vector<1x4xf32> to vector<4xf32>
    %58 = vector.shape_cast %57 : vector<4xf32> to vector<1x4xf32>
    %59 = arith.subf %58, %55 : vector<1x4xf32>
    %60 = vector.broadcast %59 : vector<1x4xf32> to vector<8x4xf32>
    %61 = arith.mulf %19, %60 : vector<8x4xf32>
    %62 = vector.broadcast %55 : vector<1x4xf32> to vector<8x4xf32>
    %63 = arith.addf %62, %61 : vector<8x4xf32>
    %64 = vector.extract_strided_slice %16 {offsets = [1, 0, 0], sizes = [1, 8, 4], strides = [1, 1, 1]} : vector<3x8x4xf32> to vector<1x8x4xf32>
    %65 = vector.shape_cast %64 : vector<1x8x4xf32> to vector<8x4xf32>
    %66 = arith.subf %41, %30 : vector<8x4xf32>
    %67 = arith.mulf %65, %66 : vector<8x4xf32>
    %68 = arith.addf %30, %67 : vector<8x4xf32>
    %69 = arith.subf %63, %52 : vector<8x4xf32>
    %70 = arith.mulf %65, %69 : vector<8x4xf32>
    %71 = arith.addf %52, %70 : vector<8x4xf32>
    %72 = vector.extract_strided_slice %16 {offsets = [0, 0, 0], sizes = [1, 8, 4], strides = [1, 1, 1]} : vector<3x8x4xf32> to vector<1x8x4xf32>
    %73 = vector.shape_cast %72 : vector<1x8x4xf32> to vector<8x4xf32>
    %74 = arith.subf %71, %68 : vector<8x4xf32>
    %75 = arith.mulf %73, %74 : vector<8x4xf32>
    %76 = arith.addf %68, %75 : vector<8x4xf32>
    %c0_10 = arith.constant 0 : index
    %c0_11 = arith.constant 0 : index
    %77 = vector.load %arg7[%c0_10, %c0_11] : memref<8x4xf32, #tpu.memory_space<vmem>>, vector<8x4xf32>
    tpu.vector_store %arg7[%c0_10, %c0_11], %76 {strides = array<i32>} : memref<8x4xf32, #tpu.memory_space<vmem>>, vector<8x4xf32>,
    return
  }
  func.func @transform_0(%arg0: i32, %arg1: i32) -> (i32, i32) {
    %c0_i32 = arith.constant 0 : i32
    %c0_i32_0 = arith.constant 0 : i32
    return %arg0, %c0_i32 : i32, i32
  }
  func.func @transform_1(%arg0: i32, %arg1: i32) -> (i32, i32) {
    %c0_i32 = arith.constant 0 : i32
    %c0_i32_0 = arith.constant 0 : i32
    return %c0_i32, %arg1 : i32, i32
  }
  func.func @transform_2(%arg0: i32, %arg1: i32) -> (i32, i32) {
    %c0_i32 = arith.constant 0 : i32
    %c0_i32_0 = arith.constant 0 : i32
    return %c0_i32, %arg1 : i32, i32
  }
  func.func @transform_3(%arg0: i32, %arg1: i32) -> (i32, i32) {
    %c0_i32 = arith.constant 0 : i32
    %c0_i32_0 = arith.constant 0 : i32
    return %c0_i32, %arg1 : i32, i32
  }
  func.func @transform_4(%arg0: i32, %arg1: i32) -> (i32, i32) {
    %c0_i32 = arith.constant 0 : i32
    %c0_i32_0 = arith.constant 0 : i32
    return %c0_i32, %arg1 : i32, i32
  }
  func.func @transform_5(%arg0: i32, %arg1: i32) -> (i32, i32) {
    %c0_i32 = arith.constant 0 : i32
    return %arg0, %arg1 : i32, i32
  }
}

</mosaic_0001>

<bundles_post_ra>
// kernel: tpu_custom_call.1
= control target key start
LH: loop header
LB: loop body
LE: loop exit
PB: predicated region body
PF: predicated region fallthrough
CT: control target
= control target key end

     0   :  { %v264_v0 = vmov 0.0   ;;  %vm265_vm0 = vmmov 0   ;;  %vm32_vm1 = vcmask 261120   ;;  %v266_v6 = vmov 1966171168   ;;  %s324_s1 = inlined_call_operand.vmem [shape: f32[32,4], index: 1, kind: input, shape index: {}]   ;;  %s325_s0 = inlined_call_operand.vmem [shape: f32[8,32], index: 0, kind: input, shape index: {}]   ;;  %s326_s3 = inlined_call_operand.vmem [shape: f32[3,4], index: 3, kind: input, shape index: {}]   ;;  %s327_s2 = inlined_call_operand.vmem [shape: f32[1,4], index: 2, kind: input, shape index: {}]   ;;  %s328_s4 = inlined_call_operand.vmem [shape: f32[8,4], index: 4, kind: input, shape index: {}]   ;;  %s329_s5 = inlined_call_operand.vmem [shape: f32[8,4], index: 5, kind: output, shape index: {}]  }
   0x1   :  { %238 = vmatprep.subr.mxu0 %v264_v0  ;;  %v24_v1 = vld [vmem:[%s324_s1 + $0x18] sm:$0xff]  ;;  %v23_v2 = vld [vmem:[%s324_s1 + $0x10] sm:$0xff]  ;;  %246 = vmatprep.mubr.msk.f32.mxu0 %vm265_vm0, %v264_v0  ;;  %v22_v3 = vld [vmem:[%s324_s1 + $0x8] sm:$0xff]  ;;  %v117_v7 = vunpack.c.l.s4 %v266_v6  ;;  %v119_v8 = vlaneseq  ;;  %vm221_vm2 = vcmask 31744  }
   0x2   :  { %239 = vmatpush3.msra.mxu0 %v24_v1  ;;  %v21_v4 = vld [vmem:[%s324_s1] sm:$0xff] }
   0x3   :  { %240 = vmatprep.subr.mxu0 %v264_v0  ;;  %v20_v5 = vld [vmem:[%s325_s0] sm:$0xff]  ;;  %v118_v9 = vunpack.c.0.s8 %v117_v7  ;;  %v120_v10 = vshrl.u32 %v119_v8, 7 }
   0x4   :  { %241 = vmatpush3.msra.mxu0 %v23_v2  ;;  %v229_v12 = vld.sshfl [vmem:[%s326_s3] sm:$0x13 pattern:$0x75316420] }
   0x5   :  { %242 = vmatprep.subr.mxu0 %v264_v0  ;;  %v121_v11 = vsub.s32 %v118_v9, %v120_v10  ;;  %v115_v13 = vcombine.high %v229_v12, %v229_v12  ;;  %v133_v17 = vsub.s32 0, %v120_v10  ;;  %v227_v18 = vld [vmem:[%s327_s2] ss:$0 sm:$0xff]  ;;  %v174_v39 = vsub.s32 1, %v120_v10 }
   0x6   :  { %243 = vmatpush3.msra.mxu0 %v22_v3  ;;  %v167_v33 = vld [vmem:[%s328_s4] sm:$0xff]  ;;  %v184_v40 = vsub.s32 3, %v120_v10  ;;  %v194_v41 = vsub.s32 5, %v120_v10  ;;  %v204_v42 = vsub.s32 7, %v120_v10  ;;  %v189_v44 = vsub.s32 2, %v120_v10 }
   0x7   :  { %244 = vmatprep.subr.mxu0 %v264_v0  ;;  %v122_v14 = vrot.slane %v229_v12, %v121_v11  ;;  %v129_v15 = vrot.slane %v115_v13, %v121_v11  ;;  %v169_v35 = vrot.slane %v167_v33, 7  ;;  %v199_v45 = vsub.s32 4, %v120_v10 }
   0x8   :  { %245 = vmatpush3.msra.mxu0 %v21_v4  ;;  %v209_v46 = vsub.s32 6, %v120_v10  ;;  %v180_v51 = vrot.slane %v167_v33, %v133_v17  ;;  %v190_v52 = vrot.slane %v167_v33, %v189_v44 }
   0x9   :  { %247 = vmatmul.mubr.msk.f32.vlgmr.msra.gmra.mxu0 %vm32_vm1, %v20_v5  ;;  %v130_v16 = vcombine.high %v122_v14, %v122_v14  ;;  %v138_v19 = vrot.slane %v129_v15, %v133_v17  ;;  %v134_v26 = vrot.slane %v122_v14, %v133_v17  ;;  %v171_v38 = vsub.f32 %v167_v33, %v169_v35 }
   0xa   :  { %v200_v53 = vrot.slane %v167_v33, %v199_v45  ;;  %v210_v54 = vrot.slane %v167_v33, %v209_v46 }
   0xb   :  { %v142_v20 = vrot.slane %v130_v16, %v133_v17  ;;  %v175_v47 = vrot.slane %v171_v38, %v174_v39  ;;  %v185_v48 = vrot.slane %v171_v38, %v184_v40  ;;  %v195_v49 = vrot.slane %v171_v38, %v194_v41 }
   0xc   :  { %v205_v50 = vrot.slane %v171_v38, %v204_v42 }
  0xc9   :  { %v102_v21 = vpop.f32.mrf.mxu0 }
  0xca   :  { %v103_v22 = vadd.f32 %v227_v18, %v102_v21 }
  0xcb   :  { %v248_v23 = vpop.f32.mrf.mxu0 }
  0xcc   :  { %v147_v24 = vsub.f32 %v103_v22, %v138_v19  ;;  %v148_v25 = vsub.f32 %v103_v22, %v142_v20  ;;  %v146_v29 = vsub.f32 %v103_v22, %v134_v26 }
  0xce   :  { %v232_v27 = vmul.f32 -1.442695, %v148_v25  ;;  %v231_v28 = vmul.f32 -1.442695, %v147_v24  ;;  %v230_v30 = vmul.f32 -1.442695, %v146_v29 }
  0xd0   :  { %252 = vpow2.f32 %v232_v27 }
  0xd1   :  { %254 = vpow2.f32 %v231_v28 }
  0xd2   :  { %256 = vpow2.f32 %v230_v30 }
  0xdd   :  { %v253_v31 = vpop.eup %252 }
  0xde   :  { %v160_v32 = vadd.f32 1.0, %v253_v31  ;;  %v255_v34 = vpop.eup %254 }
  0xdf   :  { %v159_v36 = vadd.f32 1.0, %v255_v34  ;;  %v257_v37 = vpop.eup %256 }
  0xe0   :  { %258 = vrcp.f32 %v160_v32  ;;  %v158_v43 = vadd.f32 1.0, %v257_v37 }
  0xe1   :  { %260 = vrcp.f32 %v159_v36 }
  0xe2   :  { %262 = vrcp.f32 %v158_v43 }
  0xed   :  { %v259_v55 = vpop.eup %258 }
  0xee   :  { %v176_v56 = vmul.f32 %v259_v55, %v175_v47  ;;  %v186_v57 = vmul.f32 %v259_v55, %v185_v48  ;;  %v196_v58 = vmul.f32 %v259_v55, %v195_v49  ;;  %v206_v59 = vmul.f32 %v259_v55, %v205_v50  ;;  %v261_v2 = vpop.eup %260 }
  0xef   :  { %v263_v8 = vpop.eup %262 }
  0xf0   :  { %v181_v60 = vadd.f32 %v180_v51, %v176_v56  ;;  %v191_v61 = vadd.f32 %v190_v52, %v186_v57  ;;  %v201_v62 = vadd.f32 %v200_v53, %v196_v58  ;;  %v211_v63 = vadd.f32 %v210_v54, %v206_v59 }
  0xf2   :  { %v212_v0 = vsub.f32 %v191_v61, %v181_v60  ;;  %v215_v1 = vsub.f32 %v211_v63, %v201_v62 }
  0xf4   :  { %v213_v3 = vmul.f32 %v261_v2, %v212_v0  ;;  %v216_v4 = vmul.f32 %v261_v2, %v215_v1 }
  0xf6   :  { %v214_v5 = vadd.f32 %v213_v3, %v181_v60  ;;  %v217_v6 = vadd.f32 %v216_v4, %v201_v62 }
  0xf8   :  { %v218_v7 = vsub.f32 %v217_v6, %v214_v5 }
  0xfa   :  { %v219_v9 = vmul.f32 %v263_v8, %v218_v7 }
  0xfc   :  { %v220_v10 = vadd.f32 %v219_v9, %v214_v5 }
  0xfe   :  { %222 = vst.msk [vmem:[%s329_s5] sm:$0xff] %vm221_vm2, %v220_v10 }

</bundles_post_ra>
